<compile_context>
chip_gen: v5e
topology: v5e:2x2
jax: 0.10.0
libtpu: 0.0.40
codegen_flags: <defaults>
</compile_context>

<pallas_src>
import functools

import jax
import jax.numpy as jnp
from jax import lax
from jax.experimental import pallas as pl
from jax.experimental.pallas import tpu as pltpu

_LANE = 128


# ----------------------------------------------------------------------------------
# Small helpers: tiling / hardware queries
# ----------------------------------------------------------------------------------
def _round_up(n, m):
    return ((n + m - 1) // m) * m


def _pick_block(n, max_block, quantum=8):
    """Largest divisor of n that is <= max_block and (preferably) a multiple of
    `quantum`; n itself when it already fits; otherwise the largest divisor."""
    if n <= max_block:
        return n
    best = None
    for d in range(max_block, 0, -1):
        if n % d == 0:
            if d % quantum == 0:
                return d
            if best is None:
                best = d
    return best if best is not None else n


def _tpu_vmem_limit_bytes():
    """Per-generation scoped-VMEM cap: ~112 MiB on 128-MiB chips (v5e/v6e),
    ~48 MiB on 64-MiB chips (v7x); conservative fallback if the query fails."""
    phys = 64 * 1024 * 1024
    try:
        info = pltpu.get_tpu_info()
        phys = int(getattr(info, "vmem_capacity_bytes", phys))
    except Exception:
        pass
    return max(32 * 1024 * 1024, min(phys - 16 * 1024 * 1024, 112 * 1024 * 1024))


def _tensorcores_per_chip():
    try:
        kind = jax.devices()[0].device_kind.lower()
    except Exception:
        return 1
    return 2 if "v7" in kind else 1


def _pad_gatewise(a, h, hp, axis):
    """Pad the per-gate hidden width h -> hp along `axis` (which holds 4*h
    gate-concatenated entries), keeping the [i | f | g | o] block structure."""
    if h == hp:
        return a
    shape = a.shape
    a = a.reshape(shape[:axis] + (4, h) + shape[axis + 1:])
    pad = [(0, 0)] * a.ndim
    pad[axis + 1] = (0, hp - h)
    a = jnp.pad(a, pad)
    return a.reshape(shape[:axis] + (4 * hp,) + shape[axis + 1:])


# ----------------------------------------------------------------------------------
# Kernel 1: hoisted, time-parallel input projection  (B*T, D) @ (D, 4H) + bias
# ----------------------------------------------------------------------------------
def _input_proj_kernel(x_ref, w_ref, b_ref, out_ref):
    out_ref[...] = (
        jnp.dot(x_ref[...], w_ref[...], preferred_element_type=jnp.float32)
        + b_ref[...]
    ).astype(out_ref.dtype)


def _input_projection(x_flat, w_ih, bias_row, out_dtype, *, vmem_limit):
    bt, d = x_flat.shape
    four_h = w_ih.shape[1]
    mm_bytes = jnp.dtype(x_flat.dtype).itemsize
    gx_bytes = jnp.dtype(out_dtype).itemsize

    budget = int(0.6 * vmem_limit)
    n_block = _pick_block(four_h, 2048, _LANE)                 # lane-dim tile (N)
    fixed = 2 * (d * n_block * mm_bytes + n_block * 4)         # weight + bias (x2 buf)
    per_row = 2 * (d * mm_bytes + n_block * gx_bytes)          # x + out rows (x2 buf)
    row_cap = max(8, (budget - fixed) // max(per_row, 1))
    row_quant = 16 if mm_bytes == 2 else 8
    row_block = _pick_block(bt, int(min(row_cap, 1024)), row_quant)

    grid = (bt // row_block, four_h // n_block)
    return pl.pallas_call(
        _input_proj_kernel,
        out_shape=jax.ShapeDtypeStruct((bt, four_h), out_dtype),
        grid_spec=pltpu.PrefetchScalarGridSpec(
            num_scalar_prefetch=0,
            grid=grid,
            in_specs=[
                pl.BlockSpec((row_block, d), lambda r, n: (r, 0)),
                pl.BlockSpec((d, n_block), lambda r, n: (0, n)),
                pl.BlockSpec((1, n_block), lambda r, n: (0, n)),
            ],
            out_specs=pl.BlockSpec((row_block, n_block), lambda r, n: (r, n)),
        ),
        compiler_params=pltpu.CompilerParams(
            dimension_semantics=("parallel", "parallel"),
            vmem_limit_bytes=vmem_limit,
        ),
    )(x_flat, w_ih, bias_row)


# ----------------------------------------------------------------------------------
# Kernel 2: serial recurrence over the time axis.
# ----------------------------------------------------------------------------------
def _lstm_recurrence_kernel(gx_ref, whh_ref, h0_ref, c0_ref,
                            out_ref, hlast_ref, clast_ref,
                            h_sc, c_sc, *, hidden_size, t_chunk, group):
    tc = pl.program_id(1)
    H = hidden_size
    mm_dtype = whh_ref.dtype

    # Initialize the carried state at the first time chunk of each batch chunk
    # (time axis is innermost, so tc restarts at 0 per batch chunk).
    @pl.when(tc == 0)
    def _():
        h_sc[...] = h0_ref[...].astype(jnp.float32)
        c_sc[...] = c0_ref[...].astype(jnp.float32)

    def _sigmoid(z):
        # One EUP push (tanh) instead of two (exp + reciprocal).
        return 0.5 * jnp.tanh(0.5 * z) + 0.5

    def _step(t_idx, h, c):
        # Load only this timestep's gate slice from the VMEM-resident block:
        # keeps the live set to {h, c, g_t}, no whole-tile materialization.
        g3 = gx_ref[:, pl.ds(t_idx, 1), :]
        g_t = g3[:, 0, :].astype(jnp.float32)
        # TODO(synk): pin the loop-invariant W_hh in the MXU via
        # pltpu.matmul_push_rhs / matmul_acc_lhs / matmul_pop once validated.
        gates = g_t + jnp.dot(h.astype(mm_dtype), whh_ref[...],
                              preferred_element_type=jnp.float32)
        i_g = _sigmoid(gates[:, 0:H])
        f_g = _sigmoid(gates[:, H:2 * H])
        g_g = jnp.tanh(gates[:, 2 * H:3 * H])
        o_g = _sigmoid(gates[:, 3 * H:4 * H])
        c = f_g * c + i_g * g_g
        h = o_g * jnp.tanh(c)
        return h, c

    n_groups = t_chunk // group

    def group_body(g, carry):
        h, c = carry
        t0 = pl.multiple_of(g * group, group)
        hs = []
        for k in range(group):            # small static unroll (amortizes loop cost)
            h, c = _step(t0 + k, h, c)
            hs.append(h)
        # One sublane/lane-dense store per `group` timesteps instead of `group`
        # masked single-timestep stores.
        out_ref[:, pl.ds(t0, group), :] = jnp.stack(hs, axis=1).astype(out_ref.dtype)
        return h, c

    h, c = lax.fori_loop(0, n_groups, group_body, (h_sc[...], c_sc[...]))

    h_sc[...] = h
    c_sc[...] = c

    @pl.when(tc == pl.num_programs(1) - 1)
    def _():
        hlast_ref[...] = h.astype(hlast_ref.dtype)
        clast_ref[...] = c.astype(clast_ref.dtype)


# ----------------------------------------------------------------------------------
# Wrapper (PyTorch convention: x is [B, T, D]; weights stored transposed vs nn.Linear)
# ----------------------------------------------------------------------------------
def my_lstm_forward(x, w_ih, w_hh, b_ih, b_hh, hidden_and_cell_state=None,
                    *, matmul_dtype=jnp.bfloat16):
    """x: [B, T, D]. w_ih: [D, 4H], w_hh: [H, 4H], b_*: [4H].
    Returns (output[B,T,H], (h_T[B,H], c_T[B,H]))."""
    B, T, D = x.shape
    H = w_hh.shape[0]
    assert w_ih.shape == (D, 4 * H) and w_hh.shape == (H, 4 * H)

    vmem_limit = _tpu_vmem_limit_bytes()
    mm_bytes = jnp.dtype(matmul_dtype).itemsize
    gx_dtype = matmul_dtype if mm_bytes == 2 else jnp.float32

    # Kernel-internal hidden width padded to a lane multiple (gate slices / stores
    # lane-aligned); padded columns provably stay zero, de-padded at the boundary.
    Hp = _round_up(H, _LANE)

    if hidden_and_cell_state is not None:
        h0, c0 = hidden_and_cell_state
        h0 = h0.astype(jnp.float32)
        c0 = c0.astype(jnp.float32)
    else:
        h0 = jnp.zeros((B, H), jnp.float32)
        c0 = jnp.zeros((B, H), jnp.float32)
    if Hp != H:
        h0 = jnp.pad(h0, ((0, 0), (0, Hp - H)))
        c0 = jnp.pad(c0, ((0, 0), (0, Hp - H)))

    w_ih_p = _pad_gatewise(w_ih.astype(jnp.float32), H, Hp, axis=1)
    w_hh_p = w_hh.astype(jnp.float32)
    if Hp != H:
        w_hh_p = jnp.pad(w_hh_p, ((0, Hp - H), (0, 0)))
    w_hh_p = _pad_gatewise(w_hh_p, H, Hp, axis=1)
    bias_row = _pad_gatewise((b_ih + b_hh).astype(jnp.float32), H, Hp,
                             axis=0).reshape(1, 4 * Hp)

    # (1) Hoisted input projection: one time-parallel MXU matmul over all B*T rows.
    x_flat = x.reshape(B * T, D).astype(matmul_dtype)
    gates_x = _input_projection(x_flat, w_ih_p.astype(matmul_dtype), bias_row,
                                gx_dtype, vmem_limit=vmem_limit)
    gates_x = gates_x.reshape(B, T, 4 * Hp)            # stays batch-major

    # (2) Recurrence tiling. Batch split only on 2-TensorCore chips (v7x) and only
    #     when each half keeps full sublane packing; time chunk from a VMEM budget.
    if _tensorcores_per_chip() >= 2 and B % 32 == 0:
        b_block = B // 2
    else:
        b_block = B

    gx_bytes = jnp.dtype(gx_dtype).itemsize
    budget = int(0.6 * vmem_limit)
    fixed = (2 * Hp * 4 * Hp * mm_bytes            # W_hh block, double-buffered
             + 8 * b_block * Hp * 4                # h0/c0/h_T/c_T blocks (x2 buffers)
             + 2 * b_block * Hp * 4)               # h/c scratch
    per_t = 2 * b_block * (4 * Hp * gx_bytes + Hp * 4)   # gx + out blocks, x2 buffers
    t_cap = max(8, (budget - fixed) // max(per_t, 1))
    t_chunk = _pick_block(T, int(min(t_cap, 512)), 8)
    group = t_chunk if t_chunk < 8 else 8
    while t_chunk % group:
        group -= 1

    grid = (B // b_block, T // t_chunk)
    kernel = functools.partial(_lstm_recurrence_kernel,
                               hidden_size=Hp, t_chunk=t_chunk, group=group)

    output, h_last, c_last = pl.pallas_call(
        kernel,
        out_shape=(
            jax.ShapeDtypeStruct((B, T, Hp), jnp.float32),
            jax.ShapeDtypeStruct((B, Hp), jnp.float32),
            jax.ShapeDtypeStruct((B, Hp), jnp.float32),
        ),
        grid_spec=pltpu.PrefetchScalarGridSpec(
            num_scalar_prefetch=0,
            grid=grid,
            in_specs=[
                pl.BlockSpec((b_block, t_chunk, 4 * Hp), lambda b, t: (b, t, 0)),  # gates_x
                pl.BlockSpec((Hp, 4 * Hp), lambda b, t: (0, 0)),                   # W_hh
                pl.BlockSpec((b_block, Hp), lambda b, t: (b, 0)),                  # h0
                pl.BlockSpec((b_block, Hp), lambda b, t: (b, 0)),                  # c0
            ],
            out_specs=[
                pl.BlockSpec((b_block, t_chunk, Hp), lambda b, t: (b, t, 0)),      # output
                pl.BlockSpec((b_block, Hp), lambda b, t: (b, 0)),                  # h_T
                pl.BlockSpec((b_block, Hp), lambda b, t: (b, 0)),                  # c_T
            ],
            scratch_shapes=[
                pltpu.VMEM((b_block, Hp), jnp.float32),   # h carry
                pltpu.VMEM((b_block, Hp), jnp.float32),   # c carry
            ],
        ),
        compiler_params=pltpu.CompilerParams(
            dimension_semantics=("parallel", "arbitrary"),   # batch ||, time serial
            vmem_limit_bytes=vmem_limit,
        ),
    )(gates_x, w_hh_p.astype(matmul_dtype), h0, c0)

    if Hp != H:
        output = output[:, :, :H]
        h_last = h_last[:, :H]
        c_last = c_last[:, :H]
    return output, (h_last, c_last)


# ----------------------------------------------------------------------------------
# Pure-JAX reference matching the PyTorch module semantics.
# ----------------------------------------------------------------------------------
def _reference_lstm(x, w_ih, w_hh, b_ih, b_hh, hidden_and_cell_state=None):
    B, T, D = x.shape
    H = w_hh.shape[0]
    if hidden_and_cell_state is not None:
        h, c = hidden_and_cell_state
    else:
        h = jnp.zeros((B, H), jnp.float32)
        c = jnp.zeros((B, H), jnp.float32)

    def step(carry, x_t):
        h, c = carry
        gates = x_t @ w_ih + h @ w_hh + b_ih + b_hh
        i_g = jax.nn.sigmoid(gates[:, 0:H])
        f_g = jax.nn.sigmoid(gates[:, H:2 * H])
        g_g = jnp.tanh(gates[:, 2 * H:3 * H])
        o_g = jax.nn.sigmoid(gates[:, 3 * H:4 * H])
        c_new = f_g * c + i_g * g_g
        h_new = o_g * jnp.tanh(c_new)
        return (h_new, c_new), h_new

    (h, c), hs = jax.lax.scan(step, (h, c), jnp.transpose(x, (1, 0, 2)))
    return jnp.transpose(hs, (1, 0, 2)), (h, c)


if __name__ == "__main__":
    B, T, D, H = 2, 8, 16, 32

    key = jax.random.PRNGKey(0)
    kx, k1, k2, k3, k4, kh, kc = jax.random.split(key, 7)

    lim_ih = 1.0 / jnp.sqrt(jnp.float32(D))
    lim_hh = 1.0 / jnp.sqrt(jnp.float32(H))
    w_ih = jax.random.uniform(k1, (D, 4 * H), jnp.float32, -lim_ih, lim_ih)
    b_ih = jax.random.uniform(k2, (4 * H,), jnp.float32, -lim_ih, lim_ih)
    w_hh = jax.random.uniform(k3, (H, 4 * H), jnp.float32, -lim_hh, lim_hh)
    b_hh = jax.random.uniform(k4, (4 * H,), jnp.float32, -lim_hh, lim_hh)

    x = jax.random.normal(kx, (B, T, D), jnp.float32)
    h0 = 0.1 * jax.random.normal(kh, (B, H), jnp.float32)
    c0 = 0.1 * jax.random.normal(kc, (B, H), jnp.float32)

    # --- exact-precision path (f32 MXU inputs / f32 gates_x), zero initial state ---
    out32, (h32, c32) = my_lstm_forward(x, w_ih, w_hh, b_ih, b_hh,
                                        matmul_dtype=jnp.float32)
    jax.block_until_ready((out32, h32, c32))
    ref_out, (ref_h, ref_c) = _reference_lstm(x, w_ih, w_hh, b_ih, b_hh)
    assert out32.shape == (B, T, H)
    assert h32.shape == (B, H) and c32.shape == (B, H)
    assert jnp.allclose(out32, ref_out, atol=1e-5, rtol=1e-5)
    assert jnp.allclose(h32, ref_h, atol=1e-5, rtol=1e-5)
    assert jnp.allclose(c32, ref_c, atol=1e-5, rtol=1e-5)

    # --- provided (h0, c0) path ---
    outs, (hs, cs) = my_lstm_forward(x, w_ih, w_hh, b_ih, b_hh, (h0, c0),
                                     matmul_dtype=jnp.float32)
    jax.block_until_ready((outs, hs, cs))
    ref_out2, (ref_h2, ref_c2) = _reference_lstm(x, w_ih, w_hh, b_ih, b_hh, (h0, c0))
    assert jnp.allclose(outs, ref_out2, atol=1e-5, rtol=1e-5)
    assert jnp.allclose(hs, ref_h2, atol=1e-5, rtol=1e-5)
    assert jnp.allclose(cs, ref_c2, atol=1e-5, rtol=1e-5)

    # --- default fast path (bf16 MXU inputs + bf16 gates_x, f32 gate math / state) ---
    outbf, (hbf, cbf) = my_lstm_forward(x, w_ih, w_hh, b_ih, b_hh)
    jax.block_until_ready((outbf, hbf, cbf))
    assert jnp.allclose(outbf, ref_out, atol=5e-2, rtol=5e-2)
    assert jnp.allclose(hbf, ref_h, atol=5e-2, rtol=5e-2)
    assert jnp.allclose(cbf, ref_c, atol=5e-2, rtol=5e-2)

    print("KERNEL_OK")
</pallas_src>

<mosaic_0001>
module attributes {stable_mosaic.version = 11 : i64} {
  func.func @_input_proj_kernel(%arg0: i32, %arg1: i32, %arg2: memref<16x16xf32, #tpu.memory_space<vmem>>, %arg3: memref<16x512xf32, #tpu.memory_space<vmem>>, %arg4: memref<1x512xf32, #tpu.memory_space<vmem>>, %arg5: memref<16x512xf32, #tpu.memory_space<vmem>>) attributes {dimension_semantics = [#tpu.dimension_semantics<parallel>, #tpu.dimension_semantics<parallel>], iteration_bounds = array<i64: 1, 1>, scalar_prefetch = 0 : i64, scratch_operands = 0 : i64, tpu.core_type = #tpu.core_type<tc>, window_params = [{transform_indices = @transform_0, window_bounds = array<i64: 16, 16>}, {transform_indices = @transform_1, window_bounds = array<i64: 16, 512>}, {transform_indices = @transform_2, window_bounds = array<i64: 1, 512>}, {transform_indices = @transform_3, window_bounds = array<i64: 16, 512>}]} {
    %c0 = arith.constant 0 : index
    %c0_0 = arith.constant 0 : index
    %0 = vector.load %arg2[%c0, %c0_0] : memref<16x16xf32, #tpu.memory_space<vmem>>, vector<16x16xf32>
    %c0_1 = arith.constant 0 : index
    %c0_2 = arith.constant 0 : index
    %1 = vector.load %arg3[%c0_1, %c0_2] : memref<16x512xf32, #tpu.memory_space<vmem>>, vector<16x512xf32>
    %cst = arith.constant dense<0.000000e+00> : vector<16x512xf32>
    %2 = tpu.matmul %0, %1, %cst {dimension_numbers = #tpu.dot_dimension_numbers<[1], [0], [0], [1], [0, 0, 1, 1], [], []>} : vector<16x16xf32>, vector<16x512xf32>, vector<16x512xf32> -> vector<16x512xf32>
    %c0_3 = arith.constant 0 : index
    %c0_4 = arith.constant 0 : index
    %3 = vector.load %arg4[%c0_3, %c0_4] : memref<1x512xf32, #tpu.memory_space<vmem>>, vector<1x512xf32>
    %4 = vector.broadcast %3 : vector<1x512xf32> to vector<16x512xf32>
    %5 = arith.addf %2, %4 : vector<16x512xf32>
    %c0_5 = arith.constant 0 : index
    %c0_6 = arith.constant 0 : index
    %6 = vector.load %arg5[%c0_5, %c0_6] : memref<16x512xf32, #tpu.memory_space<vmem>>, vector<16x512xf32>
    tpu.vector_store %arg5[%c0_5, %c0_6], %5 {strides = array<i32>} : memref<16x512xf32, #tpu.memory_space<vmem>>, vector<16x512xf32>,
    return
  }
  func.func @transform_0(%arg0: i32, %arg1: i32) -> (i32, i32) {
    %c0_i32 = arith.constant 0 : i32
    %c0_i32_0 = arith.constant 0 : i32
    return %arg0, %c0_i32 : i32, i32
  }
  func.func @transform_1(%arg0: i32, %arg1: i32) -> (i32, i32) {
    %c0_i32 = arith.constant 0 : i32
    %c0_i32_0 = arith.constant 0 : i32
    return %c0_i32, %arg1 : i32, i32
  }
  func.func @transform_2(%arg0: i32, %arg1: i32) -> (i32, i32) {
    %c0_i32 = arith.constant 0 : i32
    %c0_i32_0 = arith.constant 0 : i32
    return %c0_i32, %arg1 : i32, i32
  }
  func.func @transform_3(%arg0: i32, %arg1: i32) -> (i32, i32) {
    %c0_i32 = arith.constant 0 : i32
    return %arg0, %arg1 : i32, i32
  }
}

</mosaic_0001>

<bundles_post_ra>
// kernel: tpu_custom_call.1
= control target key start
LH: loop header
LB: loop body
LE: loop exit
PB: predicated region body
PF: predicated region fallthrough
CT: control target
= control target key end

     0   :  { %8 = vsyncpa [#allocation3], 0  ;;  %s379_s0 = inlined_call_operand.hbm [shape: f32[16,16], index: 0, kind: input, shape index: {}]   ;;  %s380_s1 = inlined_call_operand.hbm [shape: f32[16,512], index: 1, kind: input, shape index: {}]   ;;  %s381_s2 = inlined_call_operand.hbm [shape: f32[1,512], index: 2, kind: input, shape index: {}]   ;;  %s382_s3 = inlined_call_operand.hbm [shape: f32[16,512], index: 3, kind: output, shape index: {}]  }
   0x1   :  { %9 = vsyncpa [#allocation6], 0  ;;  %s28_s14 = sshll.u32 %s380_s1, 4  ;;  %s29_s14 = int_to_ptr.hbm [resolvable:$true] %s28_s14 }
   0x2   :  { %10 = vsyncpa [#allocation4], 0  ;;  %s325_s15 = smov [#allocation5]   ;;  %s15_s19 = sshll.u32 %s379_s0, 4  ;;  %s16_s19 = int_to_ptr.hbm [resolvable:$true] %s15_s19 }
   0x3   :  { %s30_s16 = sshll.u32 %s325_s15, 4  ;;  %s326_s20 = smov 512   ;;  %s31_s16 = int_to_ptr.vmem [resolvable:$true] %s30_s16 }
   0x4   :  { %s327_s21 = smov 32   ;;  %s328_s22 = smov [#allocation2]  }
   0x5   :  { %36 = dma.hbm_to_vmem [thread:$0]  %s29_s14, 1024, %s31_s16, [#allocation6], %s326_s20, %s326_s20, %s327_s21  }
   0x6   :  { %s17_s23 = sshll.u32 %s328_s22, 4  ;;  %s329_s1 = smov 128   ;;  %s18_s23 = int_to_ptr.vmem [resolvable:$true] %s17_s23 }
   0x7   :  { %s330_s24 = smov 8   ;;  %s42_s27 = sshll.u32 %s381_s2, 4  ;;  %s43_s27 = int_to_ptr.hbm [resolvable:$true] %s42_s27 }
   0x8   :  { %23 = dma.hbm_to_vmem [thread:$0]  %s16_s19, 256, %s18_s23, [#allocation3], %s329_s1, %s329_s1, %s330_s24  }
   0x9   :  { %s331_s28 = smov [#allocation7]  }
   0xa   :  { %s44_s0 = sshll.u32 %s331_s28, 4  ;;  %s45_s0 = int_to_ptr.vmem [resolvable:$true] %s44_s0 }
   0xb   :  { %47 = dma.hbm_to_vmem [thread:$0]  %s43_s27, 64, %s45_s0, [#allocation6]  }
   0xc   :  { %319 = dma.done.wait [#allocation3], 256  }
   0xd   :  { %320 = vsyncadd [#allocation3], 4294967040 }
   0xe   :  { %321 = dma.done.wait [#allocation6], 1088  }
   0xf   :  { %322 = vsyncadd [#allocation6], 4294966208  ;;  %v68_v0 = vld [vmem:[#allocation5 + $0x30] sm:$0xff]  ;;  %v69_v1 = vld [vmem:[#allocation5 + $0x38] sm:$0xff]  ;;  %vm80_vm0 = vcmask 130048   ;;  %s332_s2 = smov [#allocation8]  }
  0x10   :  { %v64_v2 = vld [vmem:[#allocation5 + $0x10] sm:$0xff]  ;;  %147 = vmatpush.msra.mxu2 %v68_v0  ;;  %170 = vmatpush.msra.mxu3 %v69_v1  ;;  %v65_v3 = vld [vmem:[#allocation5 + $0x18] sm:$0xff]  ;;  %v66_v5 = vld [vmem:[#allocation5 + $0x20] sm:$0xff]  ;;  %s191_s29 = sshll.u32 %s332_s2, 4  ;;  %s193_s5 = sshll.u32 %s382_s3, 4  ;;  %s192_s29 = int_to_ptr.vmem [resolvable:$true] %s191_s29  ;;  %s194_s5 = int_to_ptr.hbm [resolvable:$true] %s193_s5 }
  0x11   :  { %v60_v4 = vld [vmem:[#allocation2] sm:$0xff]  ;;  %101 = vmatpush.msra.mxu0 %v66_v5  ;;  %v67_v6 = vld [vmem:[#allocation5 + $0x28] sm:$0xff]  ;;  %v62_v7 = vld [vmem:[#allocation5] sm:$0xff] }
  0x12   :  { %148 = vmatpush.msra.mxu2 %v64_v2  ;;  %171 = vmatpush.msra.mxu3 %v65_v3  ;;  %v63_v8 = vld [vmem:[#allocation5 + $0x8] sm:$0xff]  ;;  %v61_v9 = vld [vmem:[#allocation2 + $0x8] sm:$0xff]  ;;  %v70_v10 = vld [vmem:[#allocation7] sm:$0xf] }
  0x13   :  { %211 = vmatmul.msk.f32.vlgmr.msra.gmra.mxu2 %vm80_vm0, %v60_v4  ;;  %213 = vmatmul.msk.f32.vlgmr.msra.gmra.mxu3 %vm80_vm0, %v60_v4  ;;  %v72_v11 = vperm.slane %v70_v10, 0  ;;  %v73_v12 = vperm.slane %v70_v10, 1  ;;  %v74_v15 = vperm.slane %v70_v10, 2  ;;  %v75_v16 = vperm.slane %v70_v10, 3 }
  0x14   :  { %124 = vmatpush.msra.mxu1 %v67_v6  ;;  %102 = vmatpush.msra.mxu0 %v62_v7 }
  0x15   :  { %207 = vmatmul.msk.f32.vlgmr.msra.gmra.mxu0 %vm80_vm0, %v60_v4 }
  0x16   :  { %125 = vmatpush.msra.mxu1 %v63_v8 }
  0x17   :  { %209 = vmatmul.msk.f32.vlgmr.msra.gmra.mxu1 %vm80_vm0, %v60_v4 }
  0x1b   :  { %212 = vmatmul.msk.f32.gmra.mxu2 %vm80_vm0, %v61_v9  ;;  %214 = vmatmul.msk.f32.gmra.mxu3 %vm80_vm0, %v61_v9 }
  0x1d   :  { %208 = vmatmul.msk.f32.gmra.mxu0 %vm80_vm0, %v61_v9 }
  0x1f   :  { %210 = vmatmul.msk.f32.gmra.mxu1 %vm80_vm0, %v61_v9 }
  0x92   :  { %v104_v13 = vpop.f32.mrf.mxu0 }
  0x93   :  { %v105_v14 = vadd.f32 %v104_v13, %v72_v11 }
  0x94   :  { %v127_v17 = vpop.f32.mrf.mxu1 }
  0x95   :  { %179 = vst [vmem:[#allocation8] sm:$0xff] %v105_v14  ;;  %v128_v18 = vadd.f32 %v127_v17, %v73_v12 }
  0x96   :  { %v150_v19 = vpop.f32.mrf.mxu2  ;;  %v173_v20 = vpop.f32.mrf.mxu3 }
  0x97   :  { %180 = vst [vmem:[#allocation8 + $0x8] sm:$0xff] %v128_v18  ;;  %v151_v21 = vadd.f32 %v150_v19, %v74_v15  ;;  %v174_v22 = vadd.f32 %v173_v20, %v75_v16 }
  0x99   :  { %181 = vst [vmem:[#allocation8 + $0x10] sm:$0xff] %v151_v21 }
  0x9a   :  { %182 = vst [vmem:[#allocation8 + $0x18] sm:$0xff] %v174_v22  ;;  %v107_v23 = vpop.f32.mrf.mxu0 }
  0x9b   :  { %v108_v24 = vadd.f32 %v107_v23, %v72_v11 }
  0x9c   :  { %v130_v25 = vpop.f32.mrf.mxu1 }
  0x9d   :  { %183 = vst [vmem:[#allocation8 + $0x20] sm:$0xff] %v108_v24  ;;  %v131_v26 = vadd.f32 %v130_v25, %v73_v12 }
  0x9e   :  { %v153_v27 = vpop.f32.mrf.mxu2  ;;  %v176_v28 = vpop.f32.mrf.mxu3 }
  0x9f   :  { %184 = vst [vmem:[#allocation8 + $0x28] sm:$0xff] %v131_v26  ;;  %v154_v29 = vadd.f32 %v153_v27, %v74_v15  ;;  %v177_v30 = vadd.f32 %v176_v28, %v75_v16 }
  0xa1   :  { %185 = vst [vmem:[#allocation8 + $0x30] sm:$0xff] %v154_v29 }
  0xa2   :  { %186 = vst [vmem:[#allocation8 + $0x38] sm:$0xff] %v177_v30 }
  0xa3   :  { %199 = dma.vmem_to_hbm [thread:$0]  %s192_s29, 1024, %s194_s5, [#allocation4], %s326_s20, %s326_s20, %s327_s21  }
  0xa4   :  { %323 = dma.done.wait [#allocation4], 1024  }
  0xa5   :  { %324 = vsyncadd [#allocation4], 4294966272 }
  0xa6   :  { %204 = vsyncpa [#allocation3], 1 }
  0xa7   :  { %205 = vsyncpa [#allocation6], 1 }
  0xa8   :  { %206 = vsyncpa [#allocation4], 1 }

</bundles_post_ra>
